<compile_context>
chip_gen: v7x
topology: tpu7x:2x2x1
jax: 0.10.0
libtpu: 0.0.40
codegen_flags: <defaults>
</compile_context>

<pallas_src>
import jax
import jax.numpy as jnp
from jax import lax
from jax.experimental import pallas as pl
from jax.experimental.pallas import tpu as pltpu

VMEM = pltpu.MemorySpace.VMEM
SMEM = pltpu.MemorySpace.SMEM


# --------------------------- fused Pallas kernel -----------------------------

def dj_unsupervised_kernel(adj_ref, w_ref, b_ref, s_ref, dist_ref, loss_ref):
    a = adj_ref[...]                                              # [N, N]

    # ---- MLP_adj: s = adj @ W + b -------------------------------------------
    s_lin = jnp.dot(a, w_ref[...],
                    preferred_element_type=jnp.float32) + b_ref[...]
    s_ref[...] = s_lin                                            # module's `s` output

    # ---- pump ----------------------------------------------------------------
    # TODO(synk): `pump` is undefined in the reference source; implemented as a
    # mincut-pool style surrogate (softmax assignments, mincut + orthogonality
    # losses, pairwise assignment-space Euclidean distance matrix).
    k = s_ref.shape[1]

    # softmax over the cluster axis
    m = jnp.max(s_lin, axis=-1, keepdims=True)
    e = jnp.exp(s_lin - m)
    s = e / jnp.sum(e, axis=-1, keepdims=True)                    # [N, K]

    ssq = s * s
    sq_col = jnp.sum(ssq, axis=-1, keepdims=True)                 # [N, 1]  ||s_i||^2

    # gram = S S^T  (NT matmul, contraction over the K cluster axis)
    nt = (((1,), (1,)), ((), ()))
    gram = lax.dot_general(s, s, nt,
                           preferred_element_type=jnp.float32)    # [N, N]
    # column-broadcast of ||s_j||^2 via one small MXU matmul (no transpose/eye):
    sq_row = lax.dot_general(jnp.ones_like(s), ssq, nt,
                             preferred_element_type=jnp.float32)  # [N, N]

    # pairwise Euclidean distance matrix in assignment space
    dist2 = jnp.maximum(sq_col + sq_row - 2.0 * gram, 0.0)
    dist_ref[...] = jnp.sqrt(dist2)

    # mincut loss:  - tr(S^T A S) / tr(S^T D S)
    deg = jnp.sum(a, axis=-1, keepdims=True)                      # [N, 1]
    mincut_num = jnp.sum(a * gram)                                # tr(S^T A S)
    mincut_den = jnp.sum(deg * sq_col) + 1e-9                     # tr(S^T D S)
    mincut_loss = -(mincut_num / mincut_den)

    # ortho loss from the small K x K matrix S^T S (not the N x N gram)
    tn = (((0,), (0,)), ((), ()))
    sts = lax.dot_general(s, s, tn,
                          preferred_element_type=jnp.float32)     # [K, K]
    fro = jnp.sqrt(jnp.sum(sts * sts)) + 1e-9                     # ||S^T S||_F
    tr = jnp.sum(ssq)                                             # tr(S^T S)
    ortho_sq = jnp.maximum(2.0 - 2.0 * tr / (fro * (k ** 0.5)), 0.0)
    ortho_loss = jnp.sqrt(ortho_sq)

    loss_ref[0] = mincut_loss + ortho_loss


# --------------------------- wrapper ------------------------------------------

def dj_unsupervised_forward(params, adj):
    w, b = params["mlp_adj"]                 # w: [adj_dim, K], b: [1, K]
    n = adj.shape[0]
    k = w.shape[1]
    s, dist, loss = pl.pallas_call(
        dj_unsupervised_kernel,
        out_shape=(jax.ShapeDtypeStruct((n, k), jnp.float32),     # s
                   jax.ShapeDtypeStruct((n, n), jnp.float32),     # distance matrix
                   jax.ShapeDtypeStruct((1,), jnp.float32)),      # pump + ortho loss
        in_specs=[pl.BlockSpec(memory_space=VMEM)] * 3,
        out_specs=(pl.BlockSpec(memory_space=VMEM),
                   pl.BlockSpec(memory_space=VMEM),
                   pl.BlockSpec(memory_space=SMEM)),
        # TODO(synk): for large N, add a row-tiled grid (256-512 rows) over the
        # gram/distance matmuls, bf16 MXU operands, and an explicit
        # pltpu.CompilerParams(vmem_limit_bytes=...); unnecessary at this size.
    )(adj, w, b)
    return s, loss[0], dist


# --------------------------- params -------------------------------------------

def init_params(key, adj_dim, num_centers):
    kw, kb = jax.random.split(key)
    bound = 1.0 / (adj_dim ** 0.5)
    w = jax.random.uniform(kw, (adj_dim, num_centers), jnp.float32, -bound, bound)
    b = jax.random.uniform(kb, (1, num_centers), jnp.float32, -bound, bound)
    return {"mlp_adj": (w, b)}


if __name__ == "__main__":
    N = 16                 # num nodes == adj_dim
    num_centers = 4

    key = jax.random.PRNGKey(0)
    k_adj, k_p = jax.random.split(key)
    a = (jax.random.uniform(k_adj, (N, N)) > 0.7).astype(jnp.float32)
    adj = jnp.maximum(a, a.T) * (1.0 - jnp.eye(N, dtype=jnp.float32))  # symmetric, no self loops

    params = init_params(k_p, N, num_centers)

    fwd = jax.jit(dj_unsupervised_forward)
    s, loss, dist = fwd(params, adj)
    jax.block_until_ready((s, loss, dist))

    assert s.shape == (N, num_centers)
    assert dist.shape == (N, N)
    assert bool(jnp.all(jnp.isfinite(s)))
    assert bool(jnp.all(jnp.isfinite(dist)))
    assert bool(jnp.isfinite(loss))
    print("KERNEL_OK")
</pallas_src>

<mosaic_0001>
module attributes {stable_mosaic.version = 11 : i64} {
  func.func @dj_unsupervised_kernel(%arg0: memref<16x16xf32, #tpu.memory_space<vmem>>, %arg1: memref<16x4xf32, #tpu.memory_space<vmem>>, %arg2: memref<1x4xf32, #tpu.memory_space<vmem>>, %arg3: memref<16x4xf32, #tpu.memory_space<vmem>>, %arg4: memref<16x16xf32, #tpu.memory_space<vmem>>, %arg5: memref<1xf32, #tpu.memory_space<smem>>) attributes {dimension_semantics = [], scalar_prefetch = 0 : i64, scratch_operands = 0 : i64, tpu.core_type = #tpu.core_type<tc>} {
    %c0 = arith.constant 0 : index
    %c0_0 = arith.constant 0 : index
    %0 = vector.load %arg0[%c0, %c0_0] : memref<16x16xf32, #tpu.memory_space<vmem>>, vector<16x16xf32>
    %c0_1 = arith.constant 0 : index
    %c0_2 = arith.constant 0 : index
    %1 = vector.load %arg1[%c0_1, %c0_2] : memref<16x4xf32, #tpu.memory_space<vmem>>, vector<16x4xf32>
    %cst = arith.constant dense<0.000000e+00> : vector<16x4xf32>
    %2 = tpu.matmul %0, %1, %cst {dimension_numbers = #tpu.dot_dimension_numbers<[1], [0], [0], [1], [0, 0, 1, 1], [], []>} : vector<16x16xf32>, vector<16x4xf32>, vector<16x4xf32> -> vector<16x4xf32>
    %c0_3 = arith.constant 0 : index
    %c0_4 = arith.constant 0 : index
    %3 = vector.load %arg2[%c0_3, %c0_4] : memref<1x4xf32, #tpu.memory_space<vmem>>, vector<1x4xf32>
    %4 = vector.broadcast %3 : vector<1x4xf32> to vector<16x4xf32>
    %5 = arith.addf %2, %4 : vector<16x4xf32>
    %c0_5 = arith.constant 0 : index
    %c0_6 = arith.constant 0 : index
    %6 = vector.load %arg3[%c0_5, %c0_6] : memref<16x4xf32, #tpu.memory_space<vmem>>, vector<16x4xf32>
    tpu.vector_store %arg3[%c0_5, %c0_6], %5 {strides = array<i32>} : memref<16x4xf32, #tpu.memory_space<vmem>>, vector<16x4xf32>,
    %cst_7 = arith.constant dense<0xFF800000> : vector<16xf32>
    %7 = vector.multi_reduction <maximumf>, %5, %cst_7 [1] : vector<16x4xf32> to vector<16xf32>
    %8 = vector.shape_cast %7 : vector<16xf32> to vector<16x1xf32>
    %9 = vector.broadcast %8 : vector<16x1xf32> to vector<16x4xf32>
    %10 = arith.subf %5, %9 : vector<16x4xf32>
    %11 = math.exp %10 : vector<16x4xf32>
    %cst_8 = arith.constant dense<0.000000e+00> : vector<16xf32>
    %12 = vector.multi_reduction <add>, %11, %cst_8 [1] : vector<16x4xf32> to vector<16xf32>
    %13 = vector.shape_cast %12 : vector<16xf32> to vector<16x1xf32>
    %14 = vector.broadcast %13 : vector<16x1xf32> to vector<16x4xf32>
    %15 = arith.divf %11, %14 : vector<16x4xf32>
    %16 = arith.mulf %15, %15 : vector<16x4xf32>
    %cst_9 = arith.constant dense<0.000000e+00> : vector<16xf32>
    %17 = vector.multi_reduction <add>, %16, %cst_9 [1] : vector<16x4xf32> to vector<16xf32>
    %18 = vector.shape_cast %17 : vector<16xf32> to vector<16x1xf32>
    %cst_10 = arith.constant dense<0.000000e+00> : vector<16x16xf32>
    %19 = tpu.matmul %15, %15, %cst_10 {dimension_numbers = #tpu.dot_dimension_numbers<[1], [1], [0], [0], [0, 0, 1, 0], [], []>} : vector<16x4xf32>, vector<16x4xf32>, vector<16x16xf32> -> vector<16x16xf32>
    %cst_11 = arith.constant 1.000000e+00 : f32
    %20 = vector.broadcast %cst_11 : f32 to vector<16x4xf32>
    %cst_12 = arith.constant dense<0.000000e+00> : vector<16x16xf32>
    %21 = tpu.matmul %20, %16, %cst_12 {dimension_numbers = #tpu.dot_dimension_numbers<[1], [1], [0], [0], [0, 0, 1, 0], [], []>} : vector<16x4xf32>, vector<16x4xf32>, vector<16x16xf32> -> vector<16x16xf32>
    %22 = vector.broadcast %18 : vector<16x1xf32> to vector<16x16xf32>
    %23 = arith.addf %22, %21 : vector<16x16xf32>
    %cst_13 = arith.constant 2.000000e+00 : f32
    %24 = vector.broadcast %cst_13 : f32 to vector<16x16xf32>
    %25 = arith.mulf %24, %19 : vector<16x16xf32>
    %26 = arith.subf %23, %25 : vector<16x16xf32>
    %cst_14 = arith.constant 0.000000e+00 : f32
    %27 = vector.broadcast %cst_14 : f32 to vector<16x16xf32>
    %28 = arith.maximumf %26, %27 : vector<16x16xf32>
    %29 = math.sqrt %28 : vector<16x16xf32>
    %c0_15 = arith.constant 0 : index
    %c0_16 = arith.constant 0 : index
    %30 = vector.load %arg4[%c0_15, %c0_16] : memref<16x16xf32, #tpu.memory_space<vmem>>, vector<16x16xf32>
    tpu.vector_store %arg4[%c0_15, %c0_16], %29 {strides = array<i32>} : memref<16x16xf32, #tpu.memory_space<vmem>>, vector<16x16xf32>,
    %cst_17 = arith.constant dense<0.000000e+00> : vector<16xf32>
    %31 = vector.multi_reduction <add>, %0, %cst_17 [1] : vector<16x16xf32> to vector<16xf32>
    %32 = vector.shape_cast %31 : vector<16xf32> to vector<16x1xf32>
    %33 = arith.mulf %0, %19 : vector<16x16xf32>
    %34 = vector.shape_cast %33 : vector<16x16xf32> to vector<1x16x16xf32>
    %cst_18 = arith.constant dense<0.000000e+00> : vector<1xf32>
    %35 = vector.multi_reduction <add>, %34, %cst_18 [1, 2] : vector<1x16x16xf32> to vector<1xf32>
    %36 = vector.shape_cast %35 : vector<1xf32> to vector<1x1x1xf32>
    %37 = vector.extract %36[0, 0, 0] : f32 from vector<1x1x1xf32>
    %38 = arith.mulf %32, %18 : vector<16x1xf32>
    %39 = vector.shape_cast %38 : vector<16x1xf32> to vector<1x16x1xf32>
    %cst_19 = arith.constant dense<0.000000e+00> : vector<1xf32>
    %40 = vector.multi_reduction <add>, %39, %cst_19 [1, 2] : vector<1x16x1xf32> to vector<1xf32>
    %41 = vector.shape_cast %40 : vector<1xf32> to vector<1x1x1xf32>
    %42 = vector.extract %41[0, 0, 0] : f32 from vector<1x1x1xf32>
    %cst_20 = arith.constant 9.99999971E-10 : f32
    %43 = arith.addf %42, %cst_20 : f32
    %44 = arith.divf %37, %43 : f32
    %cst_21 = arith.constant 0.000000e+00 : f32
    %45 = arith.subf %cst_21, %44 : f32
    %cst_22 = arith.constant dense<0.000000e+00> : vector<4x4xf32>
    %46 = tpu.matmul %15, %15, %cst_22 {dimension_numbers = #tpu.dot_dimension_numbers<[0], [0], [1], [1], [0, 1, 1, 1], [], []>} : vector<16x4xf32>, vector<16x4xf32>, vector<4x4xf32> -> vector<4x4xf32>
    %47 = arith.mulf %46, %46 : vector<4x4xf32>
    %48 = vector.shape_cast %47 : vector<4x4xf32> to vector<1x4x4xf32>
    %cst_23 = arith.constant dense<0.000000e+00> : vector<1xf32>
    %49 = vector.multi_reduction <add>, %48, %cst_23 [1, 2] : vector<1x4x4xf32> to vector<1xf32>
    %50 = vector.shape_cast %49 : vector<1xf32> to vector<1x1x1xf32>
    %51 = vector.extract %50[0, 0, 0] : f32 from vector<1x1x1xf32>
    %52 = math.sqrt %51 : f32
    %cst_24 = arith.constant 9.99999971E-10 : f32
    %53 = arith.addf %52, %cst_24 : f32
    %54 = vector.shape_cast %16 : vector<16x4xf32> to vector<1x16x4xf32>
    %cst_25 = arith.constant dense<0.000000e+00> : vector<1xf32>
    %55 = vector.multi_reduction <add>, %54, %cst_25 [1, 2] : vector<1x16x4xf32> to vector<1xf32>
    %56 = vector.shape_cast %55 : vector<1xf32> to vector<1x1x1xf32>
    %57 = vector.extract %56[0, 0, 0] : f32 from vector<1x1x1xf32>
    %cst_26 = arith.constant 2.000000e+00 : f32
    %58 = arith.mulf %cst_26, %57 : f32
    %cst_27 = arith.constant 2.000000e+00 : f32
    %59 = arith.mulf %53, %cst_27 : f32
    %60 = arith.divf %58, %59 : f32
    %cst_28 = arith.constant 2.000000e+00 : f32
    %61 = arith.subf %cst_28, %60 : f32
    %cst_29 = arith.constant 0.000000e+00 : f32
    %62 = arith.maximumf %61, %cst_29 : f32
    %63 = math.sqrt %62 : f32
    %64 = arith.addf %45, %63 : f32
    %c0_30 = arith.constant 0 : index
    %65 = memref.load %arg5[%c0_30] : memref<1xf32, #tpu.memory_space<smem>>
    memref.store %64, %arg5[%c0_30] : memref<1xf32, #tpu.memory_space<smem>>
    return
  }
}

</mosaic_0001>

<bundles_post_ra>
// kernel: dj_unsupervised_forward.1
= control target key start
LH: loop header
LB: loop body
LE: loop exit
PB: predicated region body
PF: predicated region fallthrough
CT: control target
= control target key end

     0   :  { %11 = vsyncpa [#allocation3], 0  ;;  %vm30_vm0 = vcmask 130048   ;;  %s846_s0 = inlined_call_operand.vmem [shape: f32[16,16], index: 0, kind: input, shape index: {}]   ;;  %s847_s1 = inlined_call_operand.vmem [shape: f32[16,4], index: 1, kind: input, shape index: {}]   ;;  %s848_s2 = inlined_call_operand.vmem [shape: f32[1,4], index: 2, kind: input, shape index: {}]   ;;  %s849_s3 = inlined_call_operand.vmem [shape: f32[16,4], index: 3, kind: output, shape index: {0}]   ;;  %s850_s4 = inlined_call_operand.hbm [shape: f32[16,16], index: 4, kind: output, shape index: {1}]   ;;  %s851_s5 = inlined_call_operand.hbm [shape: f32[1], index: 5, kind: output, shape index: {2}]  }
   0x1   :  { %v21_v0 = vld [vmem:[%s847_s1] sm:$0xff]  ;;  %v22_v1 = vld [vmem:[%s847_s1 + $0x8] sm:$0xff] }
   0x2   :  { %v768_v2 = vld [vmem:[%s846_s0] sm:$0xff]  ;;  %v620_v3 = vpack.c.bf16 %v22_v1, %v21_v0 }
   0x3   :  { %596 = vmatprep.mubr.msk.f32.mxu0 %vm30_vm0, %v768_v2 }
   0x4   :  { %12 = vsyncpa [#allocation4], 0  ;;  %621 = vmatprep.subr.bf16.mxu0 %v620_v3  ;;  %v775_v4 = vld [vmem:[%s846_s0 + $0x8] sm:$0xff]  ;;  %v565_v5 = vld [vmem:[%s848_s2] ss:$0 sm:$0xff]  ;;  %vm112_vm1 = vcmask 31744  }
   0x5   :  { %623 = vmatpush3.bf16.msra.mxu0 %v620_v3  ;;  %v720_v22 = vmov 1.0   ;;  %vm625_vm2 = vmpackc.low %vm112_vm1, %vm112_vm1  ;;  %v334_v36 = vsel %vm30_vm0, %v768_v2, 0.0  ;;  %v721_v37 = vmov 0.0|0.0   ;;  %v337_v38 = vsel %vm30_vm0, %v775_v4, 0.0  ;;  %s724_s11 = smov [#allocation2]  }
   0x6   :  { %vm722_vm3 = vmmov 0   ;;  %v723_v39 = vmov 0.0   ;;  %vm356_vm4 = vcmask 7168   ;;  %vm481_vm9 = vcmask 27648   ;;  %s539_s12 = sshll.u32 %s724_s11, 4  ;;  %s540_s12 = int_to_ptr.vmem [resolvable:$true] %s539_s12 }
   0x7   :  { %s684_s13 = scalar_lea.vmem %s540_s12, 256  ;;  %p689_p1 = scmp.lt.s32.totalorder %s540_s12, %s540_s12 }
   0x8   :  { %597 = vmatmul.mubr.msk.f32.vlgmr.msra.gmra.mrb[0].mxu0 %vm30_vm0, %v775_v4  ;;  %p685_p0 = scmp.ne.s32.totalorder %s540_s12, %s684_s13  ;;  %p690_p2 = scmp.lt.s32.totalorder %s684_s13, %s684_s13 }
   0x9   :  { %610 = vmatprep.mubr.msk.f32.mxu0 %vm112_vm1, %v720_v22 }
   0xa   :  { %p691_p3 = por %p690_p2, %p689_p1 }
   0xc   :  { %p692_p4 = pnand %p691_p3, %p685_p0 }
  0xdb   :  { %v598_v6 = vpop.f32.mrb[0].mxu0 }
  0xdc   :  { %v109_v7 = vadd.f32 %v598_v6, %v565_v5  ;;  %v103_v8 = vpop.f32.mrb[1].mxu0 }
  0xdd   :  { %v104_v9 = vadd.f32 %v565_v5, %v103_v8 }
  0xde   :  { %114 = vst.msk [vmem:[%s849_s3 + $0x8] sm:$0xff] %vm112_vm1, %v109_v7  ;;  %v118_v11 = vsel %vm112_vm1, %v109_v7, -inf }
  0xdf   :  { %113 = vst.msk [vmem:[%s849_s3] sm:$0xff] %vm112_vm1, %v104_v9  ;;  %v115_v10 = vsel %vm112_vm1, %v104_v9, -inf }
  0xe0   :  { %116 = vmax.xlane.f32.xlu0 %v115_v10 }
  0xe4   :  { %119 = vmax.xlane.f32.xlu0 %v118_v11 }
 0x16d   :  { %v117_v12 = vpop.xlane.xlu0 %116 }
 0x16e   :  { %v121_v13 = vsub.f32 %v104_v9, %v117_v12 }
 0x170   :  { %v123_v14 = vmul.f32 1.442695, %v121_v13 }
 0x171   :  { %v120_v15 = vpop.xlane.xlu0 %119 }
 0x172   :  { %664 = vpow2.f32 %v123_v14  ;;  %v122_v16 = vsub.f32 %v109_v7, %v120_v15 }
 0x174   :  { %v125_v17 = vmul.f32 1.442695, %v122_v16 }
 0x176   :  { %666 = vpow2.f32 %v125_v17 }
 0x17c   :  { %v665_v18 = vpop.eup %664 }
 0x17d   :  { %v127_v19 = vsel %vm112_vm1, %v665_v18, 0.0 }
 0x17e   :  { %128 = vadd.xlane.f32.xlu1 %v127_v19 }
 0x180   :  { %v667_v20 = vpop.eup %666 }
 0x181   :  { %v130_v21 = vsel %vm112_vm1, %v667_v20, 0.0 }
 0x182   :  { %131 = vadd.xlane.f32.xlu1 %v130_v21 }
 0x20b   :  { %v129_v23 = vpop.xlane.xlu1 %128 }
 0x20c   :  { %668 = vrcp.f32 %v129_v23 }
 0x20f   :  { %v132_v24 = vpop.xlane.xlu1 %131 }
 0x210   :  { %670 = vrcp.f32 %v132_v24 }
 0x216   :  { %v669_v25 = vpop.eup %668 }
 0x217   :  { %v134_v26 = vmul.f32 %v669_v25, %v665_v18 }
 0x219   :  { %375 = vxpose.xlu0.b32.start [1/2] (short) (narrow) %v134_v26, 8  ;;  %603 = vmatprep.mubr.msk.f32.mxu1 %vm112_vm1, %v134_v26  ;;  %v137_v27 = vmul.f32 %v134_v26, %v134_v26 }
 0x21a   :  { %v671_v28 = vpop.eup %670 }
 0x21b   :  { %v139_v29 = vsel %vm112_vm1, %v137_v27, 0.0  ;;  %v136_v30 = vmul.f32 %v671_v28, %v667_v20 }
 0x21c   :  { %140 = vadd.xlane.f32.xlu1 %v139_v29 }
 0x21d   :  { %376 = vxpose.xlu0.b32.end [2/2] (short) (narrow) %v136_v30, 8  ;;  %v624_v31 = vpack.c.bf16 %v136_v30, %v134_v26  ;;  %v138_v32 = vmul.f32 %v136_v30, %v136_v30 }
 0x21f   :  { %626 = vmatprep.subr.msk.bf16.mxu1 %vm625_vm2, %v624_v31  ;;  %v142_v33 = vsel %vm112_vm1, %v138_v32, 0.0  ;;  %v630_v34 = vpack.c.bf16 %v138_v32, %v137_v27 }
 0x220   :  { %629 = vmatpush3.bf16.xpose.msk.msra.mxu1 %vm625_vm2, %v624_v31  ;;  %143 = vadd.xlane.f32.xlu1 %v142_v33  ;;  %v800_v35 = vadd.f32 %v142_v33, %v139_v29 }
 0x221   :  { %632 = vmatprep.subr.msk.bf16.mxu0 %vm625_vm2, %v630_v34  ;;  %636 = vmatprep.subr.bf16.mxu1 %v721_v37 }
 0x222   :  { %635 = vmatpush3.bf16.xpose.msk.msra.mxu0 %vm625_vm2, %v630_v34 }
 0x224   :  { %335 = vadd.xlane.f32.xlu1 %v334_v36 }
 0x227   :  { %604 = vmatmul.mubr.msk.f32.vlgmr.msra.gmra.mrb[0].mxu1 %vm112_vm1, %v136_v30 }
 0x228   :  { %638 = vmatpush3.bf16.msra.mxu1 %v624_v31  ;;  %338 = vadd.xlane.f32.xlu1 %v337_v38 }
 0x229   :  { %611 = vmatmul.mubr.msk.f32.vlgmr.msra.gmra.mrb[2].mxu0 %vm112_vm1, %v720_v22  ;;  %617 = vmatprep.mubr.msk.f32.mxu1 %vm722_vm3, %v723_v39 }
 0x299   :  { %v391_v40 = vpop.trf.xlu0 }
 0x29a   :  { %618 = vmatmul.mubr.msk.f32.vlgmr.msra.gmra.mrb[2].mxu1 %vm30_vm0, %v391_v40 }
 0x2a9   :  { %v141_v41 = vpop.xlane.xlu1 %140 }
 0x2ad   :  { %v144_v42 = vpop.xlane.xlu1 %143 }
 0x2b1   :  { %v336_v43 = vpop.xlane.xlu1 %335 }
 0x2b2   :  { %v354_v55 = vmul.f32 %v336_v43, %v141_v41 }
 0x2b4   :  { %v357_v1 = vsel %vm356_vm4, %v354_v55, 0.0 }
 0x2b5   :  { %v339_v44 = vpop.xlane.xlu1 %338 }
 0x2b6   :  { %v355_v48 = vmul.f32 %v339_v44, %v144_v42 }
 0x2b8   :  { %v358_v62 = vsel %vm356_vm4, %v355_v48, 0.0 }
 0x2fa   :  { %v605_v45 = vpop.f32.mrb[0].mxu1 }
 0x2fb   :  { %v341_v46 = vmul.f32 %v605_v45, %v775_v4  ;;  %v217_v47 = vpop.f32.mrb[1].mxu1  ;;  %v313_v51 = vmul.f32 2.0, %v605_v45 }
 0x2fc   :  { %v340_v49 = vmul.f32 %v217_v47, %v768_v2  ;;  %v612_v50 = vpop.f32.mrb[2].mxu0  ;;  %v312_v56 = vmul.f32 2.0, %v217_v47  ;;  %v359_v2 = vadd.f32 %v358_v62, %v357_v1 }
 0x2fd   :  { %v311_v52 = vadd.f32 %v612_v50, %v144_v42  ;;  %v301_v53 = vpop.f32.mrb[3].mxu0  ;;  %v343_v54 = vsel %vm30_vm0, %v341_v46, 0.0 }
 0x2fe   :  { %v310_v57 = vadd.f32 %v301_v53, %v141_v41  ;;  %v342_v58 = vsel %vm30_vm0, %v340_v49, 0.0 }
 0x2ff   :  { %v315_v59 = vsub.f32 %v311_v52, %v313_v51  ;;  %v344_v60 = vadd.f32 %v343_v54, %v342_v58 }
 0x300   :  { %v314_v61 = vsub.f32 %v310_v57, %v312_v56 }
 0x301   :  { %v317_v63 = vmax.f32 %v315_v59, 0.0  ;;  %345 = vadd.xlane.f32.xlu1 %v344_v60 }
 0x302   :  { %v316_v0 = vmax.f32 %v314_v61, 0.0 }
 0x303   :  { %672 = vrsqrt.f32 %v317_v63  ;;  %vm327_vm5 = vcmp.eq.f32.partialorder %v317_v63, inf  ;;  %v330_v7 = vand.u32 2147483648, %v317_v63  ;;  %vm329_vm7 = vcmp.eq.f32.partialorder %v317_v63, 0.0 }
 0x304   :  { %674 = vrsqrt.f32 %v316_v0  ;;  %vm320_vm6 = vcmp.eq.f32.partialorder %v316_v0, inf  ;;  %v323_v8 = vand.u32 2147483648, %v316_v0  ;;  %vm322_vm8 = vcmp.eq.f32.partialorder %v316_v0, 0.0 }
 0x305   :  { %360 = vadd.xlane.f32.xlu1 %v359_v2 }
 0x30d   :  { %v673_v3 = vpop.eup %672 }
 0x30e   :  { %v675_v4 = vpop.eup %674  ;;  %v326_v5 = vmul.f32 %v673_v3, %v317_v63 }
 0x30f   :  { %v319_v6 = vmul.f32 %v675_v4, %v316_v0 }
 0x310   :  { %v328_v9 = vsel %vm327_vm5, %v317_v63, %v326_v5 }
 0x311   :  { %v321_v10 = vsel %vm320_vm6, %v316_v0, %v319_v6  ;;  %v331_v11 = vsel %vm329_vm7, %v330_v7, %v328_v9 }
 0x312   :  { %v324_v12 = vsel %vm322_vm8, %v323_v8, %v321_v10  ;;  %333 = vst.msk [vmem:[#allocation2 + $0x8] sm:$0xff] %vm30_vm0, %v331_v11 }
 0x313   :  { %332 = vst.msk [vmem:[#allocation2] sm:$0xff] %vm30_vm0, %v324_v12 }
 0x36d   :  { %v476_v13 = vpop.f32.mrb[2].mxu1 }
 0x36e   :  { %v480_v14 = vmul.f32 %v476_v13, %v476_v13  ;;  %v619_v15 = vpop.f32.mrb[3].mxu1 }
 0x370   :  { %v482_v16 = vsel %vm481_vm9, %v480_v14, 0.0 }
 0x371   :  { %483 = vadd.xlane.f32.xlu1 %v482_v16 }
 0x375   :  { %503 = vadd.xlane.f32.xlu1 %v800_v35 }
 0x38e   :  { %v346_v17 = vpop.xlane.xlu1 %345 }
 0x38f   :  { %v347_v18 = vrot.slane %v346_v17, 4 }
 0x391   :  { %v348_v19 = vadd.f32 %v347_v18, %v346_v17 }
 0x392   :  { %v361_v20 = vpop.xlane.xlu1 %360 }
 0x393   :  { %v349_v21 = vrot.slane %v348_v19, 2  ;;  %v362_v22 = vrot.slane %v361_v20, 4 }
 0x395   :  { %v363_v23 = vadd.f32 %v362_v22, %v361_v20  ;;  %v350_v24 = vadd.f32 %v349_v21, %v348_v19 }
 0x397   :  { %v364_v25 = vrot.slane %v363_v23, 2  ;;  %v351_v26 = vrot.slane %v350_v24, 1 }
 0x399   :  { %v352_v27 = vadd.f32 %v351_v26, %v350_v24  ;;  %v365_v28 = vadd.f32 %v364_v25, %v363_v23 }
 0x39b   :  { %639 = vpush %v352_v27  ;;  %v366_v29 = vrot.slane %v365_v28, 1 }
 0x39d   :  { %v367_v30 = vadd.f32 %v366_v29, %v365_v28 }
 0x39f   :  { %641 = vpush %v367_v30 }
 0x3cc   :  { %s816_s2 = spop %639 }
 0x3d0   :  { %s642_s3 = spop %641 }
 0x3d1   :  { %s369_s30 = sadd.f32 1e-09, %s642_s3 }
 0x3d3   :  { %v370_v31 = vstv %s369_s30 }
 0x3d4   :  { %676 = vrcp.f32 %v370_v31 }
 0x3de   :  { %v677_v32 = vpop.eup %676 }
 0x3df   :  { %643 = vpush %v677_v32 }
 0x3fe   :  { %v484_v33 = vpop.xlane.xlu1 %483 }
 0x3ff   :  { %v485_v34 = vrot.slane %v484_v33, 4 }
 0x401   :  { %v486_v35 = vadd.f32 %v485_v34, %v484_v33 }
 0x402   :  { %v504_v40 = vpop.xlane.xlu1 %503 }
 0x403   :  { %v487_v36 = vrot.slane %v486_v35, 2  ;;  %v505_v41 = vrot.slane %v504_v40, 4 }
 0x405   :  { %v488_v37 = vadd.f32 %v487_v36, %v486_v35  ;;  %v506_v42 = vadd.f32 %v505_v41, %v504_v40 }
 0x407   :  { %v489_v38 = vrot.slane %v488_v37, 1  ;;  %v507_v44 = vrot.slane %v506_v42, 2 }
 0x409   :  { %v490_v39 = vadd.f32 %v489_v38, %v488_v37  ;;  %v508_v45 = vadd.f32 %v507_v44, %v506_v42 }
 0x40b   :  { %645 = vpush %v490_v39  ;;  %v509_v47 = vrot.slane %v508_v45, 1 }
 0x40d   :  { %v510_v52 = vadd.f32 %v509_v47, %v508_v45 }
 0x410   :  { %s818_s6 = spop %643 }
 0x43c   :  { %s646_s7 = spop %645 }
 0x43d   :  { %v492_v43 = vstv %s646_s7 }
 0x43e   :  { %678 = vrsqrt.f32 %v492_v43  ;;  %vm495_vm10 = vcmp.eq.f32.partialorder %v492_v43, inf  ;;  %v498_v49 = vand.u32 2147483648, %v492_v43  ;;  %vm497_vm11 = vcmp.eq.f32.partialorder %v492_v43, 0.0 }
 0x448   :  { %v679_v46 = vpop.eup %678 }
 0x449   :  { %v494_v48 = vmul.f32 %v679_v46, %v492_v43 }
 0x44b   :  { %v496_v50 = vsel %vm495_vm10, %v492_v43, %v494_v48 }
 0x44c   :  { %v499_v51 = vsel %vm497_vm11, %v498_v49, %v496_v50 }
 0x44d   :  { %647 = vpush %v499_v51 }
 0x44e   :  { %649 = vpush %v510_v52 }
 0x47e   :  { %s648_s8 = spop %647 }
 0x47f   :  { %s501_s9 = sadd.f32 1e-09, %s648_s8 }
 0x481   :  { %s513_s10 = smul.f32 2.0, %s501_s9 }
 0x483   :  { %v514_v53 = vstv %s513_s10 }
 0x484   :  { %680 = vrcp.f32 %v514_v53 }
 0x485   :  { %695 = shalt.err (!%p692_p4)
}
 0x486   :  { %s696_s16 = scalar_lea.hbm %s850_s4, 256 }
 0x487   :  { %p697_p5 = scmp.ne.s32.totalorder %s850_s4, %s696_s16  ;;  %p700_p6 = scmp.lt.u32.totalorder %s696_s16, %s850_s4 }
 0x489   :  { %p702_p7 = pnand %p700_p6, %p697_p5 }
 0x48b   :  { %705 = shalt.err (!%p702_p7)
}
 0x48c   :  { %s725_s21 = smov 128   ;;  %s726_s22 = smov 8  }
 0x48d   :  { %545 = dma.vmem_to_hbm [thread:$0]  %s540_s12, 256, %s850_s4, [#allocation3], %s725_s21, %s725_s21, %s726_s22  }
 0x48e   :  { %v681_v54 = vpop.eup %680  ;;  %s650_s25 = spop %649  ;;  %s727_s0 = smov 0.0  }
 0x48f   :  { %651 = vpush %v681_v54  ;;  %s512_s1 = smul.f32 2.0, %s650_s25  ;;  %s706_s10 = scalar_lea.hbm %s851_s5, 16 }
 0x490   :  { %s373_s4 = smul.f32 %s818_s6, %s816_s2  ;;  %p707_p8 = scmp.ne.s32.totalorder %s851_s5, %s706_s10 }
 0x491   :  { %p710_p9 = scmp.lt.u32.totalorder %s706_s10, %s851_s5 }
 0x492   :  { %s374_s3 = ssub.f32 0.0, %s373_s4 }
 0x493   :  { %p712_p10 = pnand %p710_p9, %p707_p8 }
 0x4c0   :  { %s652_s26 = spop %651 }
 0x4c1   :  { %s517_s27 = smul.f32 %s652_s26, %s512_s1 }
 0x4c3   :  { %s518_s28 = ssub.f32 2.0, %s517_s27 }
 0x4c5   :  { %s519_s29 = smax.f32 %s727_s0, %s518_s28 }
 0x4c6   :  { %v520_v55 = vstv %s519_s29 }
 0x4c7   :  { %682 = vrsqrt.f32 %v520_v55  ;;  %vm523_vm12 = vcmp.eq.f32.partialorder %v520_v55, inf  ;;  %v526_v58 = vand.u32 2147483648, %v520_v55  ;;  %vm525_vm13 = vcmp.eq.f32.partialorder %v520_v55, 0.0 }
 0x4d1   :  { %v683_v56 = vpop.eup %682 }
 0x4d2   :  { %v522_v57 = vmul.f32 %v683_v56, %v520_v55 }
 0x4d4   :  { %v524_v59 = vsel %vm523_vm12, %v520_v55, %v522_v57 }
 0x4d5   :  { %v527_v60 = vsel %vm525_vm13, %v526_v58, %v524_v59 }
 0x4d6   :  { %653 = vpush %v527_v60 }
 0x507   :  { %s654_s30 = spop %653 }
 0x508   :  { %s529_s7 = sadd.f32 %s654_s30, %s374_s3 }
 0x50a   :  { %531 = sst [smem:[#allocation5]] %s529_s7 }
 0x50b   :  { %715 = shalt.err (!%p712_p10)
}
 0x50c   :  { %s728_s15 = smov [#allocation5]  }
 0x50d   :  { %553 = dma.smem_to_hbm %s728_s15, 16, %s851_s5, [#allocation4]  }
 0x50e   :  { %716 = dma.done.wait [#allocation3], 256  }
 0x50f   :  { %717 = vsyncadd [#allocation3], 4294967040 }
 0x510   :  { %718 = dma.done.wait [#allocation4], 16  }
 0x511   :  { %719 = vsyncadd [#allocation4], 4294967280 }
 0x512   :  { %562 = sfence }
 0x513   :  { %563 = vsyncpa [#allocation3], 1 }
 0x514   :  { %564 = vsyncpa [#allocation4], 1 }

</bundles_post_ra>
